<compile_context>
chip_gen: v7x
topology: tpu7x:2x2x1
jax: 0.10.0
libtpu: 0.0.40
codegen_flags: <defaults>
</compile_context>

<pallas_src>
import math

import jax
import jax.numpy as jnp
from jax.experimental import pallas as pl
from jax.experimental.pallas import tpu as pltpu


# ----------------------------------------------------------------------------
# Module buffers / parameter plumbing (mirrors the PyTorch __init__)
# ----------------------------------------------------------------------------
def _positional_embedding(seq_len, d_model):
    """Sinusoidal PE table, identical to the PyTorch PositionalEmbedding buffer."""
    position = jnp.arange(seq_len, dtype=jnp.float32)[:, None]                 # (T, 1)
    div_term = jnp.exp(jnp.arange(0, d_model, 2, dtype=jnp.float32)
                       * (-math.log(10000.0) / d_model))                       # (D/2,)
    pe = jnp.zeros((seq_len, d_model), dtype=jnp.float32)
    pe = pe.at[:, 0::2].set(jnp.sin(position * div_term))
    pe = pe.at[:, 1::2].set(jnp.cos(position * div_term))
    return pe


def _vmem_budgets():
    """(per-step working-set budget, scoped vmem_limit_bytes) per TPU generation.

    v5e/v6e: 128 MiB physical VMEM -> the kernel is HBM-write-bound, so favor large
             output blocks / few grid steps.
    v7x:      64 MiB physical VMEM -> smaller working set, scoped limit <= ~48 MiB.
    """
    try:
        cap = pltpu.get_tpu_info().vmem_capacity_bytes
    except Exception:
        cap = 64 * 1024 * 1024
    if cap >= 96 * 1024 * 1024:
        return 40 * 1024 * 1024, 64 * 1024 * 1024
    return 24 * 1024 * 1024, 48 * 1024 * 1024


def _choose_block_b(B, T, c_in, d_model, itemsize, budget):
    """Largest batch chunk that (a) divides B, (b) keeps the per-step working set
    (lane-padded, double-buffered blocks + f32 temporaries) inside `budget`, and
    (c) prefers >= 2 grid steps when B >= 2 so the "parallel" batch axis can be
    sharded across both v7x TensorCores."""
    lane = lambda w: -(-w // 128) * 128          # lane-padded width in VMEM / vregs

    def working_set(bb):
        n = bb * T
        io = 2 * n * (lane(c_in) + lane(d_model)) * itemsize     # double-buffered x/out
        tmp = n * (2 * lane(c_in) + lane(3 * c_in)) * itemsize   # x_prev / x_next / xin
        tmp += n * lane(d_model) * 4                             # f32 accumulator y
        resident = (3 * c_in + T) * lane(d_model) * 4            # taps + PE table
        return io + tmp + resident

    fits = [bb for bb in range(1, B + 1) if B % bb == 0 and working_set(bb) <= budget]
    if not fits:
        return 1
    multi = [bb for bb in fits if B // bb >= 2]
    return max(multi) if (B >= 2 and multi) else max(fits)


# ----------------------------------------------------------------------------
# Kernel
# ----------------------------------------------------------------------------
def _data_embedding_kernel(x_ref, wk_ref, pe_ref, o_ref):
    """One grid step: `block_b` batch rows.

    x_ref  : (block_b, T, c_in)   -- input dtype (f32 or bf16), never upcast here
    wk_ref : (3*c_in, d_model)    -- conv taps stacked [x[t-1] | x[t] | x[t+1]]
    pe_ref : (T, d_model) f32
    o_ref  : (block_b, T, d_model)
    """
    bb, t, c = x_ref.shape
    d = o_ref.shape[-1]
    n = bb * t

    # Flatten batch rows into the sublane axis (layout-free when T is a multiple of
    # the sublane tile; see module docstring).
    x = x_ref[...].reshape(n, c)

    # Per-row circular time shifts on the flattened slab. pltpu.roll wraps around the
    # whole (n, c) slab; a single where per neighbor patches the batch-row boundary.
    x_prev = pltpu.roll(x, shift=1, axis=0)          # x[b, tt-1]  (interior rows)
    x_next = pltpu.roll(x, shift=n - 1, axis=0)      # x[b, tt+1]  (interior rows)
    if bb > 1:
        t_idx = jax.lax.broadcasted_iota(jnp.int32, (n, c), 0) % t
        x_prev = jnp.where(t_idx == 0,
                           pltpu.roll(x, shift=n - t + 1, axis=0), x_prev)
        x_next = jnp.where(t_idx == t - 1,
                           pltpu.roll(x, shift=t - 1, axis=0), x_next)
    # (bb == 1: the slab wrap *is* the per-row circular wrap, no where needed.)

    # Fused circular Conv1d (kernel_size=3, no bias): a single MXU matmul with f32
    # accumulation instead of three tap matmuls + VPU adds.
    xin = jnp.concatenate([x_prev, x, x_next], axis=-1)             # (n, 3*c)
    y = jnp.dot(xin, wk_ref[...], preferred_element_type=jnp.float32)

    # + positional embedding (f32), broadcast over the batch rows of this block.
    y = y.reshape(bb, t, d) + pe_ref[...][None]

    # TODO(synk): nn.Dropout(p=0.1) is treated as identity (inference mode); a
    # training-mode variant would draw a mask via pltpu.prng_seed / prng_random_bits.
    o_ref[...] = y.astype(o_ref.dtype)


# ----------------------------------------------------------------------------
# Wrapper
# ----------------------------------------------------------------------------
def data_embedding(x, conv_weight, *, block_b=None):
    """Pallas TPU forward of DataEmbedding.

    x:           (B, T, c_in)
    conv_weight: (d_model, c_in, 3)   -- PyTorch Conv1d weight layout
    returns      (B, T, d_model), dtype of x
    """
    B, T, c_in = x.shape
    d_model = conv_weight.shape[0]

    # Layout plumbing outside the hot loop: stack the 3 taps along the contraction
    # dim so the kernel does one (n, 3*c_in) @ (3*c_in, d_model) matmul. Tap k
    # multiplies x[t-1+k]; rows are ordered [tap0 | tap1 | tap2] to match the concat.
    wk = jnp.transpose(conv_weight, (2, 1, 0)).reshape(3 * c_in, d_model)
    wk = wk.astype(x.dtype)                 # native bf16 MXU path when x is bf16
    pe = _positional_embedding(T, d_model)  # (T, d_model) f32

    budget, vmem_limit = _vmem_budgets()
    if block_b is None:
        block_b = _choose_block_b(B, T, c_in, d_model,
                                  jnp.dtype(x.dtype).itemsize, budget)
    assert B % block_b == 0
    grid = (B // block_b,)
    # TODO(synk): add a time-chunked (halo'd) grid for the B == 1 / very large T
    # regime so pipelining and v7x megacore sharding are preserved there as well.

    return pl.pallas_call(
        _data_embedding_kernel,
        out_shape=jax.ShapeDtypeStruct((B, T, d_model), x.dtype),
        grid_spec=pltpu.PrefetchScalarGridSpec(
            num_scalar_prefetch=0,
            grid=grid,
            in_specs=[
                pl.BlockSpec((block_b, T, c_in), lambda i: (i, 0, 0)),      # x
                pl.BlockSpec((3 * c_in, d_model), lambda i: (0, 0)),        # taps (resident)
                pl.BlockSpec((T, d_model), lambda i: (0, 0)),               # PE (resident)
            ],
            out_specs=pl.BlockSpec((block_b, T, d_model), lambda i: (i, 0, 0)),
        ),
        compiler_params=pltpu.CompilerParams(
            dimension_semantics=("parallel",),
            vmem_limit_bytes=vmem_limit,
        ),
    )(x, wk, pe)


# ----------------------------------------------------------------------------
# Pure-JAX reference (PyTorch semantics) for the in-script correctness checks
# ----------------------------------------------------------------------------
def ref_data_embedding(x, conv_weight):
    _, T, _ = x.shape
    d_model = conv_weight.shape[0]
    hp = jax.lax.Precision.HIGHEST
    xf = x.astype(jnp.float32)
    x_prev = jnp.roll(xf, 1, axis=1)
    x_next = jnp.roll(xf, -1, axis=1)
    y = (jnp.einsum("btc,dc->btd", x_prev, conv_weight[:, :, 0], precision=hp)
         + jnp.einsum("btc,dc->btd", xf, conv_weight[:, :, 1], precision=hp)
         + jnp.einsum("btc,dc->btd", x_next, conv_weight[:, :, 2], precision=hp))
    return y + _positional_embedding(T, d_model)[None]


# ----------------------------------------------------------------------------
if __name__ == "__main__":
    key = jax.random.PRNGKey(0)
    kw, kwi, kx1, kx2, kxi = jax.random.split(key, 5)

    c_in, d_model = 8, 128     # d_model = one full lane group -> lane-dense stores
    T = 16                     # multiple of 8 sublanes -> layout-free in-kernel reshape

    # --- structural check: exactly-representable integer inputs / {-1,0,1} taps ---
    # Every product and partial sum is exact regardless of MXU pass count, so any
    # circular-shift / tap-stacking / indexing bug shows up as an O(1) error at a
    # near-zero tolerance (addresses the "tolerance could mask a bug" review note).
    B = 4
    w_int = jax.random.randint(kwi, (d_model, c_in, 3), -1, 2).astype(jnp.float32)
    x_int = jax.random.randint(kxi, (B, T, c_in), -4, 5).astype(jnp.float32)
    y = jax.block_until_ready(data_embedding(x_int, w_int))
    y_ref = ref_data_embedding(x_int, w_int)
    assert y.shape == (B, T, d_model) and y.dtype == x_int.dtype
    err = float(jnp.max(jnp.abs(y - y_ref)))
    assert err <= 1e-6, ("structural/int", err)

    # --- numeric checks: Gaussian inputs, kaiming_normal-style conv weight ---
    w_std = math.sqrt(2.0 / (c_in * 3))
    conv_weight = w_std * jax.random.normal(kw, (d_model, c_in, 3), dtype=jnp.float32)
    for name, kk, Bn in (("B=2", kx1, 2), ("B=4 multi-row blocks", kx2, 4)):
        x = jax.random.normal(kk, (Bn, T, c_in), dtype=jnp.float32)
        y = jax.block_until_ready(data_embedding(x, conv_weight))
        y_ref = ref_data_embedding(x, conv_weight)
        assert y.shape == (Bn, T, d_model)
        err = float(jnp.max(jnp.abs(y - y_ref)))
        # This tolerance only absorbs f32 MXU pass-count differences vs the
        # HIGHEST-precision XLA reference; structural correctness is pinned by the
        # exact-integer test above.
        assert err <= 2e-2, (name, err)

    print("KERNEL_OK")
</pallas_src>

<mosaic_0001>
module attributes {stable_mosaic.version = 11 : i64} {
  func.func @_data_embedding_kernel(%arg0: i32, %arg1: memref<2x16x8xf32, #tpu.memory_space<vmem>>, %arg2: memref<24x128xf32, #tpu.memory_space<vmem>>, %arg3: memref<16x128xf32, #tpu.memory_space<vmem>>, %arg4: memref<2x16x128xf32, #tpu.memory_space<vmem>>) attributes {dimension_semantics = [#tpu.dimension_semantics<parallel>], iteration_bounds = array<i64: 2>, scalar_prefetch = 0 : i64, scratch_operands = 0 : i64, tpu.core_type = #tpu.core_type<tc>, window_params = [{transform_indices = @transform_0, window_bounds = array<i64: 2, 16, 8>}, {pipeline_mode = #tpu.pipeline_mode<synchronous>, transform_indices = @transform_1, window_bounds = array<i64: 24, 128>}, {pipeline_mode = #tpu.pipeline_mode<synchronous>, transform_indices = @transform_2, window_bounds = array<i64: 16, 128>}, {transform_indices = @transform_3, window_bounds = array<i64: 2, 16, 128>}]} {
    %c0 = arith.constant 0 : index
    %c0_0 = arith.constant 0 : index
    %c0_1 = arith.constant 0 : index
    %0 = vector.load %arg1[%c0, %c0_0, %c0_1] : memref<2x16x8xf32, #tpu.memory_space<vmem>>, vector<2x16x8xf32>
    %1 = vector.shape_cast %0 : vector<2x16x8xf32> to vector<32x8xf32>
    %c1_i32 = arith.constant 1 : i32
    %2 = tpu.dynamic_rotate %1 by %c1_i32 dim 0 : vector<32x8xf32>, i32 -> vector<32x8xf32>
    %c31_i32 = arith.constant 31 : i32
    %3 = tpu.dynamic_rotate %1 by %c31_i32 dim 0 : vector<32x8xf32>, i32 -> vector<32x8xf32>
    %4 = tpu.iota {dimensions = array<i32: 0>} : vector<32x8xi32>
    %c16_i32 = arith.constant 16 : i32
    %c0_i32 = arith.constant 0 : i32
    %5 = arith.cmpi eq, %c16_i32, %c0_i32 : i32
    %c1_i32_2 = arith.constant 1 : i32
    %6 = arith.select %5, %c1_i32_2, %c16_i32 : i32
    %7 = vector.broadcast %6 : i32 to vector<32x8xi32>
    %8 = arith.remsi %4, %7 : vector<32x8xi32>
    %c0_i32_3 = arith.constant 0 : i32
    %9 = vector.broadcast %c0_i32_3 : i32 to vector<32x8xi32>
    %10 = arith.cmpi ne, %8, %9 : vector<32x8xi32>
    %c0_i32_4 = arith.constant 0 : i32
    %11 = vector.broadcast %c0_i32_4 : i32 to vector<32x8xi32>
    %12 = arith.cmpi slt, %8, %11 : vector<32x8xi32>
    %c0_i32_5 = arith.constant 0 : i32
    %13 = arith.cmpi slt, %6, %c0_i32_5 : i32
    %14 = vector.broadcast %13 : i1 to vector<32x8xi1>
    %15 = vector.broadcast %14 : vector<32x8xi1> to vector<32x8xi1>
    %16 = arith.xori %12, %15 : vector<32x8xi1>
    %17 = arith.andi %16, %10 : vector<32x8xi1>
    %18 = vector.broadcast %6 : i32 to vector<32x8xi32>
    %19 = arith.addi %8, %18 : vector<32x8xi32>
    %20 = arith.select %17, %19, %8 : vector<32x8xi1>, vector<32x8xi32>
    %c0_i32_6 = arith.constant 0 : i32
    %21 = vector.broadcast %c0_i32_6 : i32 to vector<32x8xi32>
    %22 = arith.cmpi eq, %20, %21 : vector<32x8xi32>
    %c17_i32 = arith.constant 17 : i32
    %23 = tpu.dynamic_rotate %1 by %c17_i32 dim 0 : vector<32x8xf32>, i32 -> vector<32x8xf32>
    %24 = arith.select %22, %23, %2 : vector<32x8xi1>, vector<32x8xf32>
    %c15_i32 = arith.constant 15 : i32
    %25 = vector.broadcast %c15_i32 : i32 to vector<32x8xi32>
    %26 = arith.cmpi eq, %20, %25 : vector<32x8xi32>
    %c15_i32_7 = arith.constant 15 : i32
    %27 = tpu.dynamic_rotate %1 by %c15_i32_7 dim 0 : vector<32x8xf32>, i32 -> vector<32x8xf32>
    %28 = arith.select %26, %27, %3 : vector<32x8xi1>, vector<32x8xf32>
    %29 = tpu.concatenate %24, %1, %28 in 1 : vector<32x8xf32>, vector<32x8xf32>, vector<32x8xf32> -> vector<32x24xf32>
    %c0_8 = arith.constant 0 : index
    %c0_9 = arith.constant 0 : index
    %30 = vector.load %arg2[%c0_8, %c0_9] : memref<24x128xf32, #tpu.memory_space<vmem>>, vector<24x128xf32>
    %cst = arith.constant dense<0.000000e+00> : vector<32x128xf32>
    %31 = tpu.matmul %29, %30, %cst {dimension_numbers = #tpu.dot_dimension_numbers<[1], [0], [0], [1], [0, 0, 1, 1], [], []>} : vector<32x24xf32>, vector<24x128xf32>, vector<32x128xf32> -> vector<32x128xf32>
    %32 = vector.shape_cast %31 : vector<32x128xf32> to vector<2x16x128xf32>
    %c0_10 = arith.constant 0 : index
    %c0_11 = arith.constant 0 : index
    %33 = vector.load %arg3[%c0_10, %c0_11] : memref<16x128xf32, #tpu.memory_space<vmem>>, vector<16x128xf32>
    %34 = vector.shape_cast %33 : vector<16x128xf32> to vector<1x16x128xf32>
    %35 = vector.broadcast %34 : vector<1x16x128xf32> to vector<2x16x128xf32>
    %36 = arith.addf %32, %35 : vector<2x16x128xf32>
    %c0_12 = arith.constant 0 : index
    %c0_13 = arith.constant 0 : index
    %c0_14 = arith.constant 0 : index
    %37 = vector.load %arg4[%c0_12, %c0_13, %c0_14] : memref<2x16x128xf32, #tpu.memory_space<vmem>>, vector<2x16x128xf32>
    tpu.vector_store %arg4[%c0_12, %c0_13, %c0_14], %36 {strides = array<i32>} : memref<2x16x128xf32, #tpu.memory_space<vmem>>, vector<2x16x128xf32>,
    return
  }
  func.func @transform_0(%arg0: i32) -> (i32, i32, i32) {
    %c0_i32 = arith.constant 0 : i32
    %c0_i32_0 = arith.constant 0 : i32
    %c0_i32_1 = arith.constant 0 : i32
    return %arg0, %c0_i32, %c0_i32_0 : i32, i32, i32
  }
  func.func @transform_1(%arg0: i32) -> (i32, i32) {
    %c0_i32 = arith.constant 0 : i32
    %c0_i32_0 = arith.constant 0 : i32
    %c0_i32_1 = arith.constant 0 : i32
    return %c0_i32, %c0_i32_0 : i32, i32
  }
  func.func @transform_2(%arg0: i32) -> (i32, i32) {
    %c0_i32 = arith.constant 0 : i32
    %c0_i32_0 = arith.constant 0 : i32
    %c0_i32_1 = arith.constant 0 : i32
    return %c0_i32, %c0_i32_0 : i32, i32
  }
  func.func @transform_3(%arg0: i32) -> (i32, i32, i32) {
    %c0_i32 = arith.constant 0 : i32
    %c0_i32_0 = arith.constant 0 : i32
    %c0_i32_1 = arith.constant 0 : i32
    return %arg0, %c0_i32, %c0_i32_0 : i32, i32, i32
  }
}

</mosaic_0001>

<bundles_post_ra>
// kernel: tpu_custom_call.1
= control target key start
LH: loop header
LB: loop body
LE: loop exit
PB: predicated region body
PF: predicated region fallthrough
CT: control target
= control target key end

     0   :  { %8 = vsyncpa [#allocation3], 0  ;;  %s820_s0 = inlined_call_operand.vmem [shape: f32[4,16,8], index: 0, kind: input, shape index: {}]   ;;  %s821_s1 = inlined_call_operand.vmem [shape: f32[24,128], index: 1, kind: input, shape index: {}]   ;;  %s822_s2 = inlined_call_operand.vmem [shape: f32[16,128], index: 2, kind: input, shape index: {}]   ;;  %s823_s3 = inlined_call_operand.hbm [shape: f32[4,16,128], index: 3, kind: output, shape index: {}]  }
   0x1   :  { %10 = vsyncpa [#allocation3 + $0x1], 0  ;;  %s674_s12 = smov 0   ;;  %s676_s13 = smov 0  }
   0x2   :  { %s678_s14 = smov 0   ;;  %s680_s15 = smov 0  }
   0x3 LB: > { %s695_s16 = sadd.s32 4294967295, %s648_s15   ;;  %s496_s17 = sadd.s32 4294967294, %s648_s15   ;;  %s648_s15 = sphi %s680_s15, %s833_s15   ;;  %s644_s14 = sphi %s678_s14, %s832_s14   ;;  %s640_s13 = sphi %s676_s13, %s831_s13   ;;  %s636_s12 = sphi %s674_s12, %s830_s12  }
   0x4   : > { %s699_s18 = sadd.s32 1, %s648_s15   ;;  %s91_s19 = sadd.s32 1, %s644_s14 }
   0x5   : > { %s88_s20 = ssub.s32 %s648_s15, %s699_s18  ;;  %p101_p0 = scmp.ne.s32.totalorder %s644_s14, %s640_s13 }
   0x6   : > { %p89_p1 = scmp.eq.s32.totalorder %s88_s20, 0  ;;  %p102_p2 = scmp.eq.s32.totalorder %s695_s16, 1 }
   0x7   : > { %p107_p3 = scmp.ne.s32.totalorder %s640_s13, %s636_s12  ;;  %p108_p4 = scmp.eq.s32.totalorder %s496_s17, 1 }
   0x8   : > { %s710_s21 = scalar_select %p89_p1, %s644_s14, %s91_s19  }
   0x9   : > { %p712_p5 = por %p102_p2, %p101_p0  ;;  %p716_p6 = por %p108_p4, %p107_p3 }
   0xa   : > { %p499_p7 = scmp.ge.s32.totalorder %s648_s15, 1  ;;  %p142_p8 = scmp.lt.s32.totalorder %s648_s15, 3 }
   0xc   : > { %p143_p9 = pnand %p499_p7, %p142_p8 }
   0xd   : > { %s501_s24 = sshll.u32 (!%p143_p9), %s695_s16, 1  ;;  %v183_v0 = vlaneseq (!%p143_p9)  ;;  %v308_v1 = vld [vmem:[%s821_s1] sm:$0xff] (!%p143_p9)  ;;  %v309_v2 = vld [vmem:[%s821_s1 + $0x8] sm:$0xff] (!%p143_p9)  ;;  %v310_v5 = vld [vmem:[%s821_s1 + $0x10] sm:$0xff] (!%p143_p9)  ;;  %s650_s8 = smov (!%p143_p9), 8   ;;  %vm298_vm6 = vcmask (!%p143_p9), 64512  }
   0xe   : > { %146 = sbr.rel (%p143_p9) target bundleno = 383 (0x17f), region = 32  ;;  %p168_p10 = scmp.lt.s32.totalorder (!%p143_p9), %s501_s24, 3  ;;  %v536_v3 = vpack.c.bf16 (!%p143_p9), %v309_v2, %v308_v1  ;;  %vm303_vm7 = vcmask (!%p143_p9), 130048   ;;  %vm311_vm8 = vcmask (!%p143_p9), 195584   ;;  %v410_v55 = vld [vmem:[%s822_s2 + $0x8] sm:$0xff] (!%p143_p9)  ;;  %v409_v56 = vld [vmem:[%s822_s2] sm:$0xff] (!%p143_p9) }
   0xf   : > { %v184_v4 = vshrl.u32 (!%p143_p9), %v183_v0, 7  ;;  %s651_s9 = smov (!%p143_p9), 16   ;;  %s164_s10 = sand.u32 (!%p143_p9), 1, %s640_s13  }
  0x10   : > { %537 = vmatprep.subr.bf16.mxu0 (!%p143_p9), %v536_v3  ;;  %540 = vmatprep.subr.bf16.mxu1 (!%p143_p9), %v536_v3  ;;  %s500_s11 = sshll.u32 (!%p143_p9), %s164_s10, 5  ;;  %s516_s27 = sshll.u32 (!%p143_p9), %s695_s16, 9 }
  0x11   : > { %539 = vmatpush3.bf16.msra.mxu0 (!%p143_p9), %v536_v3  ;;  %542 = vmatpush3.bf16.msra.mxu1 (!%p143_p9), %v536_v3  ;;  %v200_v6 = vadd.s32 (!%p143_p9), 16, %v184_v4  ;;  %v201_v7 = vadd.s32 (!%p143_p9), 24, %v184_v4  ;;  %v199_v8 = vadd.s32 (!%p143_p9), 8, %v184_v4  ;;  %v206_v9 = vand.u32 (!%p143_p9), 15, %v184_v4  ;;  %s166_s20 = scalar_lea.vmem (!%p143_p9), [#allocation2], %s500_s11  ;;  %s776_s30 = scalar_lea.hbm (!%p143_p9), %s823_s3, %s516_s27 }
  0x12   : > { %528 = vmatprep.subr.mxu0 (!%p143_p9), %v310_v5  ;;  %541 = vmatprep.subr.mxu1 (!%p143_p9), %v310_v5  ;;  %vm194_vm0 = vcmp.lt.s32.totalorder (!%p143_p9), %v184_v4, 7  ;;  %vm185_vm1 = vcmp.lt.s32.totalorder (!%p143_p9), %v184_v4, 1  ;;  %s778_s16 = scalar_lea.sflag (!%p143_p9), [#allocation3], %s164_s10  ;;  %s652_s5 = smov (!%p143_p9), [#allocation2]  }
  0x13   : > { %v220_v13 = vand.u32 (!%p143_p9), 15, %v200_v6  ;;  %v227_v23 = vand.u32 (!%p143_p9), 15, %v201_v7  ;;  %v213_v24 = vand.u32 (!%p143_p9), 15, %v199_v8  ;;  %vm738_vm2 = vcmp.eq.s32.totalorder (!%p143_p9), %v206_v9, 0  ;;  %s590_s6 = sshll.u32 (!%p143_p9), %s652_s5, 4  ;;  %s591_s6 = int_to_ptr.vmem [resolvable:$false] %s590_s6 }
  0x15   : > { %s835_s24 = smov (!%p168_p10, %s501_s24), 3  ;;  %529 = vmatpush3.msra.mxu0 %v310_v5  ;;  %543 = vmatpush3.msra.mxu1 %v310_v5  ;;  %vm747_vm3 = vcmp.eq.s32.totalorder %v220_v13, 0  ;;  %vm261_vm4 = vcmp.eq.s32.totalorder %v227_v23, 15  ;;  %vm259_vm5 = vcmp.eq.s32.totalorder %v213_v24, 15 }
  0x16   : > { %s514_s4 = sshll.u32 %s835_s24, 4  ;;  %s434_s24 = sshll.u32 %s166_s20, 4  ;;  %s771_s24 = int_to_ptr.vmem [resolvable:$true] %s434_s24 }
  0x17   : > { %s172_s7 = scalar_lea.vmem %s820_s0, %s514_s4  ;;  %s586_s4 = scalar_lea.vmem %s771_s24, 512 }
  0x18   : > { %v176_v10 = vld [vmem:[%s172_s7 + $0x8] sm:$0xff]  ;;  %v175_v11 = vld [vmem:[%s172_s7] sm:$0xff]  ;;  %v178_v12 = vld [vmem:[%s172_s7 + $0x18] sm:$0xff]  ;;  %p587_p11 = scmp.ne.s32.totalorder %s771_s24, %s586_s4  ;;  %p593_p0 = scmp.lt.s32.totalorder %s771_s24, %s591_s6 }
  0x19   : > { %272 = vrot.lane.b32.xlu1 %v176_v10, %s650_s8  ;;  %v180_v14 = vrot.slane %v176_v10, 7  ;;  %v191_v15 = vrot.slane %v176_v10, 1  ;;  %270 = vrot.lane.b32.xlu0 %v175_v11, %s650_s8  ;;  %v179_v16 = vrot.slane %v175_v11, 7  ;;  %v190_v17 = vrot.slane %v175_v11, 1  ;;  %v177_v18 = vld [vmem:[%s172_s7 + $0x10] sm:$0xff]  ;;  %s592_s7 = scalar_lea.vmem %s591_s6, 1024 }
  0x1a   : > { %v182_v19 = vrot.slane %v178_v12, 7  ;;  %v193_v20 = vrot.slane %v178_v12, 1  ;;  %v181_v21 = vrot.slane %v177_v18, 7  ;;  %v192_v22 = vrot.slane %v177_v18, 1  ;;  %p588_p12 = pnand %p587_p11, %p712_p5  ;;  %p594_p1 = scmp.lt.s32.totalorder %s592_s7, %s586_s4 }
  0x1b   : > { %v188_v25 = vsel %vm185_vm1, %v179_v16, %v180_v14  ;;  %v197_v28 = vsel %vm194_vm0, %v190_v17, %v191_v15 }
  0x1c   : > { %v187_v27 = vsel %vm185_vm1, %v180_v14, %v181_v21  ;;  %v189_v29 = vsel %vm185_vm1, %v182_v19, %v179_v16  ;;  %v195_v31 = vsel %vm194_vm0, %v192_v22, %v193_v20  ;;  %v186_v33 = vsel %vm185_vm1, %v181_v21, %v182_v19  ;;  %p589_p13 = pneg %p588_p12  ;;  %p595_p2 = por %p594_p1, %p593_p0 }
  0x1d   : > { %276 = vrot.lane.b32.xlu1 %v178_v12, %s650_s8  ;;  %274 = vrot.lane.b32.xlu0 %v177_v18, %s650_s8  ;;  %v254_v32 = vsel %vm738_vm2, %v187_v27, %v189_v29  ;;  %v256_v34 = vsel %vm747_vm3, %v189_v29, %v187_v27  ;;  %v196_v35 = vsel %vm194_vm0, %v191_v15, %v192_v22 }
  0x1e   : > { %v198_v36 = vsel %vm194_vm0, %v193_v20, %v190_v17  ;;  %p596_p3 = pnand %p595_p2, %p589_p13 }
  0x1f   : > { %v265_v37 = vsel %vm261_vm4, %v196_v35, %v198_v36  ;;  %v263_v38 = vsel %vm259_vm5, %v198_v36, %v196_v35 }
  0x21   : > { %290 = vrot.lane.b32.xlu1 %v195_v31, %s651_s9  ;;  %286 = vrot.lane.b32.xlu0 %v197_v28, %s651_s9 }
  0x25   : > { %292 = vrot.lane.b32.xlu1 %v265_v37, %s651_s9  ;;  %288 = vrot.lane.b32.xlu0 %v263_v38, %s651_s9 }
  0x8b   : > { %v273_v39 = vpop.permute.xlu1 %272  ;;  %v271_v40 = vpop.permute.xlu0 %270 }
  0x8c   : > { %v299_v43 = vsel %vm298_vm6, %v254_v32, %v271_v40  ;;  %v300_v49 = vsel %vm298_vm6, %v188_v25, %v273_v39 }
  0x8f   : > { %v277_v41 = vpop.permute.xlu1 %276  ;;  %v275_v42 = vpop.permute.xlu0 %274 }
  0x90   : > { %v301_v44 = vsel %vm298_vm6, %v256_v34, %v275_v42  ;;  %v302_v50 = vsel %vm298_vm6, %v186_v33, %v277_v41 }
  0x93   : > { %v291_v45 = vpop.permute.xlu1 %290  ;;  %v287_v46 = vpop.permute.xlu0 %286 }
  0x94   : > { %v304_v47 = vsel %vm303_vm7, %v299_v43, %v287_v46  ;;  %v306_v48 = vsel %vm303_vm7, %v301_v44, %v291_v45 }
  0x95   : > { %530 = vmatprep.mubr.msk.f32.mxu0 %vm311_vm8, %v304_v47  ;;  %533 = vmatprep.mubr.msk.f32.mxu1 %vm311_vm8, %v306_v48 }
  0x97   : > { %v293_v51 = vpop.permute.xlu1 %292  ;;  %v289_v52 = vpop.permute.xlu0 %288 }
  0x98   : > { %v307_v53 = vsel %vm303_vm7, %v302_v50, %v293_v51  ;;  %v305_v54 = vsel %vm303_vm7, %v300_v49, %v289_v52 }
  0x99   : > { %531 = vmatmul.mubr.msk.f32.vlgmr.msra.gmra.mrb[0].mxu0 %vm311_vm8, %v305_v54  ;;  %534 = vmatmul.mubr.msk.f32.vlgmr.msra.gmra.mrb[0].mxu1 %vm311_vm8, %v307_v53 }
 0x16c   : > { %v532_v57 = vpop.f32.mrb[0].mxu0  ;;  %v535_v58 = vpop.f32.mrb[0].mxu1 }
 0x16d   : > { %v412_v59 = vadd.f32 %v532_v57, %v410_v55  ;;  %v414_v60 = vadd.f32 %v535_v58, %v410_v55  ;;  %v390_v61 = vpop.f32.mrb[1].mxu0  ;;  %v400_v62 = vpop.f32.mrb[1].mxu1 }
 0x16e   : > { %v411_v63 = vadd.f32 %v409_v56, %v390_v61  ;;  %v413_v0 = vadd.f32 %v409_v56, %v400_v62 }
 0x16f   : > { %416 = vst [vmem:[%s166_s20 + $0x8] sm:$0xff] %v412_v59  ;;  %418 = vst [vmem:[%s166_s20 + $0x18] sm:$0xff] %v414_v60 }
 0x170   : > { %415 = vst [vmem:[%s166_s20] sm:$0xff] %v411_v63  ;;  %417 = vst [vmem:[%s166_s20 + $0x10] sm:$0xff] %v413_v0 }
 0x171   : > { %599 = shalt.err (!%p596_p3)
}
 0x172   : > { %s600_s9 = scalar_lea.hbm %s776_s30, 512  ;;  %s604_s17 = scalar_lea.hbm %s823_s3, 1024 }
 0x173   : > { %p601_p4 = scmp.ne.s32.totalorder %s776_s30, %s600_s9  ;;  %p605_p9 = scmp.lt.u32.totalorder %s776_s30, %s823_s3 }
 0x174   : > { %p606_p10 = scmp.lt.u32.totalorder %s604_s17, %s600_s9  ;;  %p608_p12 = scmp.lt.u32.totalorder %s600_s9, %s776_s30 }
 0x175   : > { %p602_p7 = pnand %p601_p4, %p712_p5 }
 0x176   : > { %p607_p11 = por %p606_p10, %p605_p9 }
 0x177   : > { %p603_p8 = pneg %p602_p7 }
 0x178   : > { %p609_p13 = por %p608_p12, %p607_p11 }
 0x17a   : > { %p610_p0 = pnand %p609_p13, %p603_p8 }
 0x17c   : > { %613 = shalt.err (!%p610_p0)
}
 0x17d   : > { %s653_s25 = smov 128  }
 0x17e   : > { %544 = dma.vmem_to_hbm [thread:$0]  (%p712_p5), %s771_s24, 512, %s776_s30, %s778_s16, %s653_s25, %s653_s25, %s650_s8  }
 0x17f PF: > { %p550_p1 = scmp.ge.s32.totalorder %s648_s15, 2  ;;  %s449_s26 = sand.u32 1, %s636_s12  }
 0x180   : > { %s450_s27 = scalar_lea.sflag [#allocation3], %s449_s26 }
 0x181   : > { %p547_p2 = pnand %p550_p1, %p716_p6 }
 0x183   : > { %631 = dma.done.wait (!%p547_p2), %s450_s27, 512  }
 0x184   : > { %633 = vsyncadd (!%p547_p2), %s450_s27, 4294966784  ;;  %p13_p3 = scmp.ge.s32.totalorder %s699_s18, 4   ;;  %s830_s12 = smov %s640_s13 }
 0x185   : > { %s831_s13 = smov %s644_s14  ;;  %s832_s14 = smov %s710_s21 }
 0x186   : > { %s833_s15 = smov %s699_s18  ;;  %15 = sbr.rel (!%p13_p3) target bundleno = 3 (0x3), region = 67 }
 0x18d   :  { %455 = vsyncpa [#allocation3], 1 }
 0x18e   :  { %457 = vsyncpa [#allocation3 + $0x1], 1 }

</bundles_post_ra>
